<compile_context>
chip_gen: v7x
topology: tpu7x:2x2x1
jax: 0.10.0
libtpu: 0.0.40
codegen_flags: <defaults>
</compile_context>

<pallas_src>
import math
import jax
import jax.numpy as jnp
from jax.experimental import pallas as pl
from jax.experimental.pallas import tpu as pltpu  # noqa: F401  (kept for completeness)

# ----------------------------- config ---------------------------------------
BATCH = 2
SEQ = 8
D_HIDDEN = 32
NUM_HEADS = 4
NUM_OUTPUTS_PMA = 1      # PMA seeds
NUM_OUTPUTS_SUM = 2      # SumPool with ff: Linear(D, D*num_outputs, bias=False)
LN_EPS = 1e-5


def _layernorm(x, gamma, beta):
    mean = jnp.mean(x, axis=-1, keepdims=True)
    var = jnp.mean((x - mean) ** 2, axis=-1, keepdims=True)
    return (x - mean) * jax.lax.rsqrt(var + LN_EPS) * gamma + beta


# ============================ SumPool kernel =================================
def sumpool_kernel(x_ref, w_ref, o_ref):
    # x_ref: (B, N, D)   w_ref: (D, DK)   o_ref: (B, DK)
    # Whole batch in one step: one sublane reduce + one (B, D) @ (D, DK) matmul.
    s = jnp.sum(x_ref[...], axis=1)                                   # (B, D)
    o_ref[...] = jnp.dot(s, w_ref[...], preferred_element_type=jnp.float32)


def pooler_sumpool(x, w_ff_t):
    B, N, D = x.shape
    DK = w_ff_t.shape[1]
    # No grid: single kernel invocation, single consolidated (B, DK) store.
    return pl.pallas_call(
        sumpool_kernel,
        out_shape=jax.ShapeDtypeStruct((B, DK), jnp.float32),
    )(x, w_ff_t)


# ============================== PMA kernel ===================================
def _make_pma_kernel(B, N, D, H, K, scale):
    KH = K * H

    def pma_kernel(x_ref, wkv_ref, wo_ref, vp_ref, o_ref):
        # x_ref : (B*N, D)            flattened activations
        # wkv_ref: (D, 2D)            packed [Wk^T | Wv^T]
        # wo_ref : (D, D)             rFF weight
        # vp_ref : (2*KH + K + 7, D)  packed vectors (see prepare_pma_operands)
        # o_ref  : (B*K, D)
        vp = vp_ref[...]
        q_att = vp[0:KH]                     # (KH, D) head-masked seed queries
        hmask = vp[KH:2 * KH]                # (KH, D) block-diagonal head mask
        q_res = vp[2 * KH:2 * KH + K]        # (K, D)  residual (projected seed)
        r0 = 2 * KH + K
        bk, bv, bo = vp[r0:r0 + 1], vp[r0 + 1:r0 + 2], vp[r0 + 2:r0 + 3]
        g0, b0 = vp[r0 + 3:r0 + 4], vp[r0 + 4:r0 + 5]
        g1, b1 = vp[r0 + 5:r0 + 6], vp[r0 + 6:r0 + 7]

        # ---- K/V projections for the whole batch in one packed MXU push ----
        x2 = x_ref[...]                                               # (BN, D)
        kv = jnp.dot(x2, wkv_ref[...], preferred_element_type=jnp.float32)
        k3 = (kv[:, :D] + bk).reshape(B, N, D)
        v3 = (kv[:, D:] + bv).reshape(B, N, D)

        # ---- fused-head attention (no per-head loop / lane slices) ----------
        # q_att row (k*H + h) holds q[k] zeroed outside head h's dh-block, so a
        # single batched contraction yields every per-head logit at once.
        q3 = jnp.broadcast_to(q_att[None], (B, KH, D))
        logits = jnp.einsum("brd,bnd->brn", q3, k3,
                            preferred_element_type=jnp.float32) * scale   # (B,KH,N)
        m = jnp.max(logits, axis=-1, keepdims=True)
        p = jnp.exp(logits - m)
        a = p * pl.reciprocal(jnp.sum(p, axis=-1, keepdims=True), approx=True)
        attn = jnp.einsum("brn,bnd->brd", a, v3,
                          preferred_element_type=jnp.float32)             # (B,KH,D)

        # Block-diagonal head select + residual:
        #   o[b,k,d] = q[k,d] + (a_{head(d)} @ v_{head(d)})[k,d]
        o = q_res[None] + jnp.sum(
            attn.reshape(B, K, H, D) * hmask.reshape(1, K, H, D), axis=2)  # (B,K,D)
        o = o.reshape(B * K, D)

        # ---- LN -> rFF(+ReLU) residual -> LN --------------------------------
        o = _layernorm(o, g0, b0)
        o = o + jax.nn.relu(
            jnp.dot(o, wo_ref[...], preferred_element_type=jnp.float32) + bo)
        o = _layernorm(o, g1, b1)
        o_ref[...] = o.astype(o_ref.dtype)

    return pma_kernel


def prepare_pma_operands(p, H=NUM_HEADS):
    """Batch-independent packing (do once at init / outside the hot loop)."""
    K, D = p["S"].shape[1], p["S"].shape[2]
    dh = D // H
    # Hoisted seed projection (batch-independent).
    q = p["S"][0] @ p["wq_t"] + p["bq"]                               # (K, D)
    # Block-diagonal head mask: hmask[k*H+h, d] = 1 iff d // dh == h.
    hmask_h = (jnp.arange(D)[None, :] // dh ==
               jnp.arange(H)[:, None]).astype(jnp.float32)            # (H, D)
    hmask = jnp.tile(hmask_h, (K, 1))                                  # (KH, D)
    q_att = jnp.repeat(q, H, axis=0) * hmask                           # (KH, D)
    # Packed operands.
    w_kv = jnp.concatenate([p["wk_t"], p["wv_t"]], axis=1)             # (D, 2D)
    vec = jnp.concatenate(
        [q_att, hmask, q, p["bk"], p["bv"], p["bo"],
         p["g0"], p["b0"], p["g1"], p["b1"]], axis=0)                  # (2KH+K+7, D)
    return dict(w_kv=w_kv, w_o=p["wo_t"], vec=vec, K=K, H=H)


def pooler_pma(x, packed):
    B, N, D = x.shape
    K, H = packed["K"], packed["H"]
    scale = 1.0 / math.sqrt(D)      # Set Transformer scales by sqrt(dim_V)
    kernel = _make_pma_kernel(B, N, D, H, K, scale)
    # No grid: the whole batch is processed in one kernel step (everything fits
    # in VMEM).  NOTE(v7x): for large B, reintroduce a leading "parallel" batch
    # grid axis so the second TensorCore is used; at B=2 one fused step wins.
    out = pl.pallas_call(
        kernel,
        out_shape=jax.ShapeDtypeStruct((B * K, D), jnp.float32),
    )(x.reshape(B * N, D), packed["w_kv"], packed["w_o"], packed["vec"])
    return out.reshape(B, K * D)    # = self.out.view(x.size(0), -1)


# ====================== deterministic parameter init ========================
def init_params(key, D=D_HIDDEN, K=NUM_OUTPUTS_PMA, K_sum=NUM_OUTPUTS_SUM):
    ks = jax.random.split(key, 7)

    def linear_t(k, fin, fout):   # returns (W^T, b) already transposed to (in, out)
        kw, kb = jax.random.split(k)
        bound = 1.0 / math.sqrt(fin)
        w_t = jax.random.uniform(kw, (fin, fout), jnp.float32, -bound, bound)
        b = jax.random.uniform(kb, (1, fout), jnp.float32, -bound, bound)
        return w_t, b

    wq_t, bq = linear_t(ks[0], D, D)
    wk_t, bk = linear_t(ks[1], D, D)
    wv_t, bv = linear_t(ks[2], D, D)
    wo_t, bo = linear_t(ks[3], D, D)
    xav = math.sqrt(6.0 / (K + D))
    S = jax.random.uniform(ks[4], (1, K, D), jnp.float32, -xav, xav)
    # SumPool ff: Linear(D, D*K_sum, bias=False), stored pre-transposed (D, D*K_sum)
    w_ff_t, _ = linear_t(ks[5], D, D * K_sum)
    return dict(
        S=S, wq_t=wq_t, bq=bq, wk_t=wk_t, bk=bk, wv_t=wv_t, bv=bv,
        wo_t=wo_t, bo=bo,
        g0=jnp.ones((1, D), jnp.float32), b0=jnp.zeros((1, D), jnp.float32),
        g1=jnp.ones((1, D), jnp.float32), b1=jnp.zeros((1, D), jnp.float32),
        w_ff_t=w_ff_t,
    )


# ============================ pure-JAX references ============================
def ref_sumpool(x, w_ff_t):
    return jnp.sum(x, axis=1) @ w_ff_t


def ref_pma(x, p):
    B, N, D = x.shape
    K = p["S"].shape[1]
    dh = D // NUM_HEADS
    s = jnp.broadcast_to(p["S"], (B, K, D))
    q = s @ p["wq_t"] + p["bq"]
    k = x @ p["wk_t"] + p["bk"]
    v = x @ p["wv_t"] + p["bv"]
    heads = []
    for h in range(NUM_HEADS):
        qh, kh, vh = (t[..., h * dh:(h + 1) * dh] for t in (q, k, v))
        a = jax.nn.softmax(
            jnp.einsum("bkd,bnd->bkn", qh, kh) / math.sqrt(D), axis=-1)
        heads.append(qh + jnp.einsum("bkn,bnd->bkd", a, vh))
    o = jnp.concatenate(heads, axis=-1)
    o = _layernorm(o, p["g0"], p["b0"])
    o = o + jax.nn.relu(o @ p["wo_t"] + p["bo"])
    o = _layernorm(o, p["g1"], p["b1"])
    return o.reshape(B, K * D)


# ================================== main =====================================
if __name__ == "__main__":
    key = jax.random.PRNGKey(0)
    kx, kp = jax.random.split(key)
    x = jax.random.normal(kx, (BATCH, SEQ, D_HIDDEN), jnp.float32)
    params = init_params(kp)

    # mode='PMA' (default)
    packed = prepare_pma_operands(params)            # batch-independent packing
    out_pma = jax.block_until_ready(pooler_pma(x, packed))
    assert out_pma.shape == (BATCH, NUM_OUTPUTS_PMA * D_HIDDEN)
    # Tolerance relaxed vs. the exact-divide version because the kernel uses
    # pl.reciprocal(..., approx=True) in the softmax (per perf review).
    assert jnp.allclose(out_pma, ref_pma(x, params), atol=2e-3, rtol=2e-3)

    # mode='SumPool' with num_outputs > 1 (so the ff Linear exists)
    out_sum = jax.block_until_ready(pooler_sumpool(x, params["w_ff_t"]))
    assert out_sum.shape == (BATCH, NUM_OUTPUTS_SUM * D_HIDDEN)
    assert jnp.allclose(out_sum, ref_sumpool(x, params["w_ff_t"]), atol=1e-5, rtol=1e-5)

    print("KERNEL_OK")
</pallas_src>

<mosaic_0001>
module attributes {stable_mosaic.version = 11 : i64} {
  func.func @pma_kernel(%arg0: memref<16x32xf32, #tpu.memory_space<vmem>>, %arg1: memref<32x64xf32, #tpu.memory_space<vmem>>, %arg2: memref<32x32xf32, #tpu.memory_space<vmem>>, %arg3: memref<16x32xf32, #tpu.memory_space<vmem>>, %arg4: memref<2x32xf32, #tpu.memory_space<vmem>>) attributes {dimension_semantics = [], scalar_prefetch = 0 : i64, scratch_operands = 0 : i64, tpu.core_type = #tpu.core_type<tc>} {
    %c0 = arith.constant 0 : index
    %c0_0 = arith.constant 0 : index
    %0 = vector.load %arg3[%c0, %c0_0] : memref<16x32xf32, #tpu.memory_space<vmem>>, vector<16x32xf32>
    %1 = vector.extract_strided_slice %0 {offsets = [0, 0], sizes = [4, 32], strides = [1, 1]} : vector<16x32xf32> to vector<4x32xf32>
    %2 = vector.extract_strided_slice %0 {offsets = [4, 0], sizes = [4, 32], strides = [1, 1]} : vector<16x32xf32> to vector<4x32xf32>
    %3 = vector.extract_strided_slice %0 {offsets = [8, 0], sizes = [1, 32], strides = [1, 1]} : vector<16x32xf32> to vector<1x32xf32>
    %4 = vector.extract_strided_slice %0 {offsets = [9, 0], sizes = [1, 32], strides = [1, 1]} : vector<16x32xf32> to vector<1x32xf32>
    %5 = vector.extract_strided_slice %0 {offsets = [10, 0], sizes = [1, 32], strides = [1, 1]} : vector<16x32xf32> to vector<1x32xf32>
    %6 = vector.extract_strided_slice %0 {offsets = [11, 0], sizes = [1, 32], strides = [1, 1]} : vector<16x32xf32> to vector<1x32xf32>
    %7 = vector.extract_strided_slice %0 {offsets = [12, 0], sizes = [1, 32], strides = [1, 1]} : vector<16x32xf32> to vector<1x32xf32>
    %8 = vector.extract_strided_slice %0 {offsets = [13, 0], sizes = [1, 32], strides = [1, 1]} : vector<16x32xf32> to vector<1x32xf32>
    %9 = vector.extract_strided_slice %0 {offsets = [14, 0], sizes = [1, 32], strides = [1, 1]} : vector<16x32xf32> to vector<1x32xf32>
    %10 = vector.extract_strided_slice %0 {offsets = [15, 0], sizes = [1, 32], strides = [1, 1]} : vector<16x32xf32> to vector<1x32xf32>
    %c0_1 = arith.constant 0 : index
    %c0_2 = arith.constant 0 : index
    %11 = vector.load %arg0[%c0_1, %c0_2] : memref<16x32xf32, #tpu.memory_space<vmem>>, vector<16x32xf32>
    %c0_3 = arith.constant 0 : index
    %c0_4 = arith.constant 0 : index
    %12 = vector.load %arg1[%c0_3, %c0_4] : memref<32x64xf32, #tpu.memory_space<vmem>>, vector<32x64xf32>
    %cst = arith.constant dense<0.000000e+00> : vector<16x64xf32>
    %13 = tpu.matmul %11, %12, %cst {dimension_numbers = #tpu.dot_dimension_numbers<[1], [0], [0], [1], [0, 0, 1, 1], [], []>} : vector<16x32xf32>, vector<32x64xf32>, vector<16x64xf32> -> vector<16x64xf32>
    %14 = vector.extract_strided_slice %13 {offsets = [0, 0], sizes = [16, 32], strides = [1, 1]} : vector<16x64xf32> to vector<16x32xf32>
    %15 = vector.broadcast %4 : vector<1x32xf32> to vector<16x32xf32>
    %16 = arith.addf %14, %15 : vector<16x32xf32>
    %17 = vector.shape_cast %16 : vector<16x32xf32> to vector<2x8x32xf32>
    %18 = vector.extract_strided_slice %13 {offsets = [0, 32], sizes = [16, 32], strides = [1, 1]} : vector<16x64xf32> to vector<16x32xf32>
    %19 = vector.broadcast %5 : vector<1x32xf32> to vector<16x32xf32>
    %20 = arith.addf %18, %19 : vector<16x32xf32>
    %21 = vector.shape_cast %20 : vector<16x32xf32> to vector<2x8x32xf32>
    %22 = vector.shape_cast %1 : vector<4x32xf32> to vector<1x4x32xf32>
    %23 = vector.shape_cast %22 : vector<1x4x32xf32> to vector<1x4x32xf32>
    %24 = vector.broadcast %23 : vector<1x4x32xf32> to vector<2x4x32xf32>
    "tpu.trace_start"() <{level = 10 : i32, message = "brd,bnd->brn"}> : () -> ()
    %cst_5 = arith.constant dense<0.000000e+00> : vector<2x4x8xf32>
    %25 = tpu.matmul %24, %17, %cst_5 {dimension_numbers = #tpu.dot_dimension_numbers<[2], [2], [1], [1], [0, 0, 0, 1, 1, 1], [0], [0]>} : vector<2x4x32xf32>, vector<2x8x32xf32>, vector<2x4x8xf32> -> vector<2x4x8xf32>
    "tpu.trace_stop"() : () -> ()
    %cst_6 = arith.constant 0.176776692 : f32
    %26 = vector.broadcast %cst_6 : f32 to vector<2x4x8xf32>
    %27 = arith.mulf %25, %26 : vector<2x4x8xf32>
    %cst_7 = arith.constant dense<0xFF800000> : vector<2x4xf32>
    %28 = vector.multi_reduction <maximumf>, %27, %cst_7 [2] : vector<2x4x8xf32> to vector<2x4xf32>
    %29 = vector.shape_cast %28 : vector<2x4xf32> to vector<2x4x1xf32>
    %30 = vector.broadcast %29 : vector<2x4x1xf32> to vector<2x4x8xf32>
    %31 = arith.subf %27, %30 : vector<2x4x8xf32>
    %32 = math.exp %31 : vector<2x4x8xf32>
    %cst_8 = arith.constant dense<0.000000e+00> : vector<2x4xf32>
    %33 = vector.multi_reduction <add>, %32, %cst_8 [2] : vector<2x4x8xf32> to vector<2x4xf32>
    %34 = vector.shape_cast %33 : vector<2x4xf32> to vector<2x4x1xf32>
    %35 = tpu.reciprocal %34 {approx = true} : vector<2x4x1xf32> -> vector<2x4x1xf32>
    %36 = vector.broadcast %35 : vector<2x4x1xf32> to vector<2x4x8xf32>
    %37 = arith.mulf %32, %36 : vector<2x4x8xf32>
    "tpu.trace_start"() <{level = 10 : i32, message = "brn,bnd->brd"}> : () -> ()
    %cst_9 = arith.constant dense<0.000000e+00> : vector<2x4x32xf32>
    %38 = tpu.matmul %37, %21, %cst_9 {dimension_numbers = #tpu.dot_dimension_numbers<[2], [1], [1], [2], [0, 0, 0, 1, 1, 2], [0], [0]>} : vector<2x4x8xf32>, vector<2x8x32xf32>, vector<2x4x32xf32> -> vector<2x4x32xf32>
    "tpu.trace_stop"() : () -> ()
    %39 = vector.shape_cast %3 : vector<1x32xf32> to vector<1x1x32xf32>
    %40 = vector.shape_cast %38 : vector<2x4x32xf32> to vector<2x1x4x32xf32>
    %41 = vector.shape_cast %2 : vector<4x32xf32> to vector<1x1x4x32xf32>
    %42 = vector.broadcast %41 : vector<1x1x4x32xf32> to vector<2x1x4x32xf32>
    %43 = arith.mulf %40, %42 : vector<2x1x4x32xf32>
    %cst_10 = arith.constant dense<0.000000e+00> : vector<2x1x32xf32>
    %44 = vector.multi_reduction <add>, %43, %cst_10 [2] : vector<2x1x4x32xf32> to vector<2x1x32xf32>
    %45 = vector.broadcast %39 : vector<1x1x32xf32> to vector<2x1x32xf32>
    %46 = arith.addf %45, %44 : vector<2x1x32xf32>
    %47 = vector.shape_cast %46 : vector<2x1x32xf32> to vector<2x32xf32>
    %cst_11 = arith.constant dense<0.000000e+00> : vector<2xf32>
    %48 = vector.multi_reduction <add>, %47, %cst_11 [1] : vector<2x32xf32> to vector<2xf32>
    %49 = vector.shape_cast %48 : vector<2xf32> to vector<2x1xf32>
    %cst_12 = arith.constant 3.200000e+01 : f32
    %50 = vector.broadcast %cst_12 : f32 to vector<2x1xf32>
    %51 = arith.divf %49, %50 : vector<2x1xf32>
    %52 = vector.broadcast %51 : vector<2x1xf32> to vector<2x32xf32>
    %53 = arith.subf %47, %52 : vector<2x32xf32>
    %54 = arith.mulf %53, %53 : vector<2x32xf32>
    %cst_13 = arith.constant dense<0.000000e+00> : vector<2xf32>
    %55 = vector.multi_reduction <add>, %54, %cst_13 [1] : vector<2x32xf32> to vector<2xf32>
    %56 = vector.shape_cast %55 : vector<2xf32> to vector<2x1xf32>
    %cst_14 = arith.constant 3.200000e+01 : f32
    %57 = vector.broadcast %cst_14 : f32 to vector<2x1xf32>
    %58 = arith.divf %56, %57 : vector<2x1xf32>
    %59 = vector.broadcast %51 : vector<2x1xf32> to vector<2x32xf32>
    %60 = arith.subf %47, %59 : vector<2x32xf32>
    %cst_15 = arith.constant 9.99999974E-6 : f32
    %61 = vector.broadcast %cst_15 : f32 to vector<2x1xf32>
    %62 = arith.addf %58, %61 : vector<2x1xf32>
    %63 = math.rsqrt %62 : vector<2x1xf32>
    %64 = vector.broadcast %63 : vector<2x1xf32> to vector<2x32xf32>
    %65 = arith.mulf %60, %64 : vector<2x32xf32>
    %66 = vector.broadcast %7 : vector<1x32xf32> to vector<2x32xf32>
    %67 = arith.mulf %65, %66 : vector<2x32xf32>
    %68 = vector.broadcast %8 : vector<1x32xf32> to vector<2x32xf32>
    %69 = arith.addf %67, %68 : vector<2x32xf32>
    %c0_16 = arith.constant 0 : index
    %c0_17 = arith.constant 0 : index
    %70 = vector.load %arg2[%c0_16, %c0_17] : memref<32x32xf32, #tpu.memory_space<vmem>>, vector<32x32xf32>
    %cst_18 = arith.constant dense<0.000000e+00> : vector<2x32xf32>
    %71 = tpu.matmul %69, %70, %cst_18 {dimension_numbers = #tpu.dot_dimension_numbers<[1], [0], [0], [1], [0, 0, 1, 1], [], []>} : vector<2x32xf32>, vector<32x32xf32>, vector<2x32xf32> -> vector<2x32xf32>
    %72 = vector.broadcast %6 : vector<1x32xf32> to vector<2x32xf32>
    %73 = arith.addf %71, %72 : vector<2x32xf32>
    %cst_19 = arith.constant 0.000000e+00 : f32
    %74 = vector.broadcast %cst_19 : f32 to vector<2x32xf32>
    %75 = arith.maximumf %73, %74 : vector<2x32xf32>
    %76 = arith.addf %69, %75 : vector<2x32xf32>
    %cst_20 = arith.constant dense<0.000000e+00> : vector<2xf32>
    %77 = vector.multi_reduction <add>, %76, %cst_20 [1] : vector<2x32xf32> to vector<2xf32>
    %78 = vector.shape_cast %77 : vector<2xf32> to vector<2x1xf32>
    %cst_21 = arith.constant 3.200000e+01 : f32
    %79 = vector.broadcast %cst_21 : f32 to vector<2x1xf32>
    %80 = arith.divf %78, %79 : vector<2x1xf32>
    %81 = vector.broadcast %80 : vector<2x1xf32> to vector<2x32xf32>
    %82 = arith.subf %76, %81 : vector<2x32xf32>
    %83 = arith.mulf %82, %82 : vector<2x32xf32>
    %cst_22 = arith.constant dense<0.000000e+00> : vector<2xf32>
    %84 = vector.multi_reduction <add>, %83, %cst_22 [1] : vector<2x32xf32> to vector<2xf32>
    %85 = vector.shape_cast %84 : vector<2xf32> to vector<2x1xf32>
    %cst_23 = arith.constant 3.200000e+01 : f32
    %86 = vector.broadcast %cst_23 : f32 to vector<2x1xf32>
    %87 = arith.divf %85, %86 : vector<2x1xf32>
    %88 = vector.broadcast %80 : vector<2x1xf32> to vector<2x32xf32>
    %89 = arith.subf %76, %88 : vector<2x32xf32>
    %cst_24 = arith.constant 9.99999974E-6 : f32
    %90 = vector.broadcast %cst_24 : f32 to vector<2x1xf32>
    %91 = arith.addf %87, %90 : vector<2x1xf32>
    %92 = math.rsqrt %91 : vector<2x1xf32>
    %93 = vector.broadcast %92 : vector<2x1xf32> to vector<2x32xf32>
    %94 = arith.mulf %89, %93 : vector<2x32xf32>
    %95 = vector.broadcast %9 : vector<1x32xf32> to vector<2x32xf32>
    %96 = arith.mulf %94, %95 : vector<2x32xf32>
    %97 = vector.broadcast %10 : vector<1x32xf32> to vector<2x32xf32>
    %98 = arith.addf %96, %97 : vector<2x32xf32>
    %c0_25 = arith.constant 0 : index
    %c0_26 = arith.constant 0 : index
    %99 = vector.load %arg4[%c0_25, %c0_26] : memref<2x32xf32, #tpu.memory_space<vmem>>, vector<2x32xf32>
    tpu.vector_store %arg4[%c0_25, %c0_26], %98 {strides = array<i32>} : memref<2x32xf32, #tpu.memory_space<vmem>>, vector<2x32xf32>,
    return
  }
}

</mosaic_0001>

<bundles_post_ra>
// kernel: tpu_custom_call.1
= control target key start
LH: loop header
LB: loop body
LE: loop exit
PB: predicated region body
PF: predicated region fallthrough
CT: control target
= control target key end

     0   :  { %9 = vsyncpa [#allocation3], 0  ;;  %s1148_s0 = inlined_call_operand.hbm [shape: f32[16,32], index: 0, kind: input, shape index: {}]   ;;  %s1149_s1 = inlined_call_operand.hbm [shape: f32[32,64], index: 1, kind: input, shape index: {}]   ;;  %s1150_s2 = inlined_call_operand.hbm [shape: f32[32,32], index: 2, kind: input, shape index: {}]   ;;  %s1151_s3 = inlined_call_operand.hbm [shape: f32[16,32], index: 3, kind: input, shape index: {}]   ;;  %s1152_s4 = inlined_call_operand.hbm [shape: f32[2,32], index: 4, kind: output, shape index: {}]  }
   0x1   :  { %10 = vsyncpa [#allocation6], 0 }
   0x2   :  { %11 = vsyncpa [#allocation9], 0 }
   0x3   :  { %12 = vsyncpa [#allocation4], 0  ;;  %s964_s15 = smov [#allocation5]   ;;  %s965_s17 = smov [#allocation2]  }
   0x4   :  { %s30_s16 = sshll.u32 %s964_s15, 4  ;;  %s18_s18 = sshll.u32 %s965_s17, 4  ;;  %s31_s16 = int_to_ptr.vmem [resolvable:$true] %s30_s16  ;;  %s1001_s18 = int_to_ptr.vmem [resolvable:$true] %s18_s18 }
   0x5   :  { %s846_s21 = scalar_lea.hbm %s1149_s1, 512 }
   0x6   :  { %p847_p0 = scmp.ne.s32.totalorder %s1149_s1, %s846_s21  ;;  %p850_p1 = scmp.lt.u32.totalorder %s846_s21, %s1149_s1 }
   0x8   :  { %p852_p2 = pnand %p850_p1, %p847_p0 }
   0xa   :  { %855 = shalt.err (!%p852_p2)
}
   0xb   :  { %s856_s26 = scalar_lea.vmem %s31_s16, 512  ;;  %p861_p4 = scmp.lt.s32.totalorder %s31_s16, %s31_s16 }
   0xc   :  { %p857_p3 = scmp.ne.s32.totalorder %s31_s16, %s856_s26  ;;  %p862_p5 = scmp.lt.s32.totalorder %s856_s26, %s856_s26 }
   0xe   :  { %p863_p6 = por %p862_p5, %p861_p4 }
  0x10   :  { %p864_p7 = pnand %p863_p6, %p857_p3 }
  0x12   :  { %867 = shalt.err (!%p864_p7)
}
  0x13   :  { %s966_s27 = smov 128   ;;  %s967_s28 = smov 8  }
  0x14   :  { %36 = dma.hbm_to_vmem [thread:$0]  %s1149_s1, 512, %s31_s16, [#allocation6], %s966_s27, %s966_s27, %s967_s28  }
  0x15   :  { %s868_s7 = scalar_lea.hbm %s1148_s0, 256 }
  0x16   :  { %p869_p8 = scmp.ne.s32.totalorder %s1148_s0, %s868_s7  ;;  %p872_p9 = scmp.lt.u32.totalorder %s868_s7, %s1148_s0 }
  0x18   :  { %p874_p10 = pnand %p872_p9, %p869_p8 }
  0x1a   :  { %877 = shalt.err (!%p874_p10)
}
  0x1b   :  { %s878_s12 = scalar_lea.vmem %s1001_s18, 256  ;;  %p883_p12 = scmp.lt.s32.totalorder %s1001_s18, %s1001_s18 }
  0x1c   :  { %p879_p11 = scmp.ne.s32.totalorder %s1001_s18, %s878_s12  ;;  %p884_p13 = scmp.lt.s32.totalorder %s878_s12, %s878_s12 }
  0x1e   :  { %p885_p0 = por %p884_p13, %p883_p12 }
  0x20   :  { %p886_p1 = pnand %p885_p0, %p879_p11 }
  0x22   :  { %889 = shalt.err (!%p886_p1)
}
  0x23   :  { %24 = dma.hbm_to_vmem [thread:$0]  %s1148_s0, 256, %s1001_s18, [#allocation3], %s966_s27, %s966_s27, %s967_s28  }
  0x24   :  { %s968_s14 = smov [#allocation7]   ;;  %s969_s16 = smov [#allocation8]  }
  0x25   :  { %s42_s15 = sshll.u32 %s968_s14, 4  ;;  %s54_s17 = sshll.u32 %s969_s16, 4  ;;  %s43_s15 = int_to_ptr.vmem [resolvable:$true] %s42_s15  ;;  %s1038_s17 = int_to_ptr.vmem [resolvable:$true] %s54_s17 }
  0x26   :  { %s890_s21 = scalar_lea.hbm %s1150_s2, 512 }
  0x27   :  { %p891_p2 = scmp.ne.s32.totalorder %s1150_s2, %s890_s21  ;;  %p894_p3 = scmp.lt.u32.totalorder %s890_s21, %s1150_s2 }
  0x29   :  { %p896_p4 = pnand %p894_p3, %p891_p2 }
  0x2b   :  { %899 = shalt.err (!%p896_p4)
}
  0x2c   :  { %s900_s0 = scalar_lea.vmem %s43_s15, 512  ;;  %p905_p6 = scmp.lt.s32.totalorder %s43_s15, %s43_s15 }
  0x2d   :  { %p901_p5 = scmp.ne.s32.totalorder %s43_s15, %s900_s0  ;;  %p906_p7 = scmp.lt.s32.totalorder %s900_s0, %s900_s0 }
  0x2f   :  { %p907_p8 = por %p906_p7, %p905_p6 }
  0x31   :  { %p908_p9 = pnand %p907_p8, %p901_p5 }
  0x33   :  { %911 = shalt.err (!%p908_p9)
}
  0x34   :  { %48 = dma.hbm_to_vmem [thread:$0]  %s1150_s2, 512, %s43_s15, [#allocation6], %s966_s27, %s966_s27, %s967_s28  }
  0x35   :  { %s912_s5 = scalar_lea.hbm %s1151_s3, 256 }
  0x36   :  { %p913_p10 = scmp.ne.s32.totalorder %s1151_s3, %s912_s5  ;;  %p916_p11 = scmp.lt.u32.totalorder %s912_s5, %s1151_s3 }
  0x38   :  { %p918_p12 = pnand %p916_p11, %p913_p10 }
  0x3a   :  { %921 = shalt.err (!%p918_p12)
}
  0x3b   :  { %s922_s10 = scalar_lea.vmem %s1038_s17, 256  ;;  %p927_p0 = scmp.lt.s32.totalorder %s1038_s17, %s1038_s17 }
  0x3c   :  { %p923_p13 = scmp.ne.s32.totalorder %s1038_s17, %s922_s10  ;;  %p928_p1 = scmp.lt.s32.totalorder %s922_s10, %s922_s10 }
  0x3e   :  { %p929_p2 = por %p928_p1, %p927_p0 }
  0x40   :  { %p930_p3 = pnand %p929_p2, %p923_p13 }
  0x42   :  { %933 = shalt.err (!%p930_p3)
}
  0x43   :  { %60 = dma.hbm_to_vmem [thread:$0]  %s1151_s3, 256, %s1038_s17, [#allocation9], %s966_s27, %s966_s27, %s967_s28  }
  0x44   :  { %956 = dma.done.wait [#allocation3], 256  }
  0x45   :  { %957 = vsyncadd [#allocation3], 4294967040 }
  0x46   :  { %958 = dma.done.wait [#allocation6], 1024  }
  0x47   :  { %959 = vsyncadd [#allocation6], 4294966272 }
  0x48   :  { %960 = dma.done.wait [#allocation9], 256  }
  0x49   :  { %961 = vsyncadd [#allocation9], 4294967040  ;;  %v163_v0 = vlaneseq  ;;  %vm81_vm0 = vcmask 261120   ;;  %v77_v3 = vld [vmem:[#allocation5] sm:$0xff]  ;;  %v78_v4 = vld [vmem:[#allocation5 + $0x8] sm:$0xff]  ;;  %s970_s3 = smov 32  }
  0x4a   :  { %v79_v5 = vld [vmem:[#allocation5 + $0x10] sm:$0xff]  ;;  %v808_v6 = vpack.c.bf16 %v78_v4, %v77_v3  ;;  %v80_v7 = vld [vmem:[#allocation5 + $0x18] sm:$0xff]  ;;  %v1079_v10 = vld [vmem:[#allocation8 + $0x8] sm:$0xff]  ;;  %v971_v13 = vmov 0.0   ;;  %vm972_vm1 = vmmov 0   ;;  %vm330_vm2 = vcmask 60416  }
  0x4b   :  { %v1075_v1 = vshrl.u32 %v163_v0, 7  ;;  %v75_v8 = vld [vmem:[#allocation2] sm:$0xff]  ;;  %v812_v9 = vpack.c.bf16 %v80_v7, %v79_v5  ;;  %v76_v12 = vld [vmem:[#allocation2 + $0x8] sm:$0xff]  ;;  %777 = vmatprep.subr.mxu1 %v971_v13  ;;  %779 = vmatprep.mubr.msk.f32.mxu1 %vm972_vm1, %v971_v13  ;;  %v1091_v19 = vld [vmem:[#allocation8] sm:$0xff]  ;;  %s973_s27 = smov 96   ;;  %vm357_vm3 = vcmask 64512  }
  0x4c   :  { %774 = vmatprep.mubr.msk.f32.mxu0 %vm81_vm0, %v75_v8  ;;  %809 = vmatprep.subr.bf16.mxu0 %v808_v6  ;;  %v508_v50 = vrot.slane %v1091_v19, 4  ;;  %vm512_vm4 = vcmask 257024   ;;  %vm532_vm5 = vcmask 1041409   ;;  %vm535_vm6 = vcmask 254976   ;;  %s975_s28 = smov [#allocation10]  }
  0x4d   :  { %v171_v2 = vsub.s32 2, %v1075_v1  ;;  %811 = vmatpush3.bf16.msra.mxu0 %v808_v6  ;;  %v165_v14 = vsub.s32 1, %v1075_v1  ;;  %s727_s12 = sshll.u32 %s975_s28, 4  ;;  %s728_s12 = int_to_ptr.vmem [resolvable:$true] %s727_s12 }
  0x4e   :  { %813 = vmatprep.subr.bf16.mxu0 %v812_v9  ;;  %s934_s1 = scalar_lea.vmem %s728_s12, 32  ;;  %p939_p5 = scmp.lt.s32.totalorder %s728_s12, %s728_s12 }
  0x4f   :  { %v172_v11 = vrot.slane %v1079_v10, %v171_v2  ;;  %v166_v15 = vrot.slane %v1079_v10, %v165_v14  ;;  %p935_p4 = scmp.ne.s32.totalorder %s728_s12, %s934_s1  ;;  %p940_p6 = scmp.lt.s32.totalorder %s934_s1, %s934_s1 }
  0x51   :  { %174 = vrot.lane.b32.xlu1 %v172_v11, %s970_s3  ;;  %815 = vmatpush3.bf16.msra.mxu0 %v812_v9  ;;  %p941_p7 = por %p940_p6, %p939_p5 }
  0x53   :  { %p942_p8 = pnand %p941_p7, %p935_p4 }
  0x54   :  { %775 = vmatmul.mubr.msk.f32.vlgmr.msra.gmra.mrb[0].mxu0 %vm81_vm0, %v76_v12 }
  0x55   :  { %805 = vmatprep.mubr.msk.f32.mxu0 %vm972_vm1, %v971_v13 }
  0xc3   :  { %v175_v29 = vpop.permute.xlu1 %174 }
 0x127   :  { %v776_v16 = vpop.f32.mrb[0].mxu0 }
 0x128   :  { %v154_v17 = vpop.f32.mrb[1].mxu0  ;;  %v168_v20 = vadd.f32 %v776_v16, %v166_v15  ;;  %v178_v42 = vadd.f32 %v776_v16, %v175_v29 }
 0x129   :  { %v167_v18 = vadd.f32 %v166_v15, %v154_v17  ;;  %v177_v30 = vadd.f32 %v175_v29, %v154_v17  ;;  %v581_v29 = vld [vmem:[#allocation7 + $0x18] sm:$0xff] }
 0x12b   :  { %778 = vmatpush3.xpose.msk.msra.mxu1 %vm81_vm0, %v167_v18 }
 0x12c   :  { %782 = vmatprep.subr.mxu1 %v971_v13 }
 0x12e   :  { %780 = vmatmul.mubr.msk.f32.vlgmr.msra.gmra.mrb[0].mxu1 %vm81_vm0, %v1091_v19 }
 0x12f   :  { %783 = vmatpush3.xpose.msk.msra.mxu1 %vm81_vm0, %v168_v20  ;;  %784 = vmatprep.mubr.msk.f32.mxu1 %vm972_vm1, %v971_v13 }
 0x130   :  { %787 = vmatprep.subr.mxu1 %v971_v13 }
 0x132   :  { %785 = vmatmul.mubr.msk.f32.vlgmr.msra.gmra.mrb[2].mxu1 %vm81_vm0, %v1091_v19 }
 0x133   :  { %789 = vmatprep.mubr.msk.f32.mxu1 %vm972_vm1, %v971_v13 }
 0x201   :  { %v251_v21 = vpop.f32.mrb[0].mxu1 }
 0x202   :  { %v328_v22 = vmul.f32 0.17677669, %v251_v21  ;;  %v781_v23 = vpop.f32.mrb[1].mxu1 }
 0x204   :  { %v331_v24 = vsel %vm330_vm2, %v328_v22, -inf }
 0x205   :  { %332 = vmax.xlane.f32.xlu0 %v331_v24  ;;  %v324_v25 = vpop.f32.mrb[2].mxu1  ;;  %v578_v24 = vld [vmem:[#allocation7] sm:$0xff] }
 0x206   :  { %v329_v26 = vmul.f32 0.17677669, %v324_v25  ;;  %v786_v27 = vpop.f32.mrb[3].mxu1  ;;  %v579_v25 = vld [vmem:[#allocation7 + $0x8] sm:$0xff] }
 0x207   :  { %v974_v27 = vmov 0.0|0.0  }
 0x208   :  { %v334_v28 = vsel %vm330_vm2, %v329_v26, -inf  ;;  %816 = vmatprep.subr.bf16.mxu0 %v974_v27 }
 0x209   :  { %335 = vmax.xlane.f32.xlu0 %v334_v28  ;;  %v817_v28 = vpack.c.bf16 %v579_v25, %v578_v24 }
 0x20b   :  { %818 = vmatpush3.bf16.msra.mxu0 %v817_v28 }
 0x20c   :  { %819 = vmatprep.subr.bf16.mxu0 %v974_v27 }
 0x21f   :  { %354 = vrot.lane.b32.xlu0 %v177_v30, %s973_s27 }
 0x292   :  { %v333_v31 = vpop.xlane.xlu0 %332 }
 0x293   :  { %v337_v32 = vsub.f32 %v328_v22, %v333_v31 }
 0x295   :  { %v339_v33 = vmul.f32 1.442695, %v337_v32 }
 0x296   :  { %v336_v34 = vpop.xlane.xlu0 %335 }
 0x297   :  { %834 = vpow2.f32 %v339_v33  ;;  %v338_v35 = vsub.f32 %v329_v26, %v336_v34  ;;  %v580_v26 = vld [vmem:[#allocation7 + $0x10] sm:$0xff]  ;;  %v568_v34 = vsub.s32 4, %v1075_v1 }
 0x298   :  { %v820_v30 = vpack.c.bf16 %v581_v29, %v580_v26 }
 0x299   :  { %v341_v36 = vmul.f32 1.442695, %v338_v35 }
 0x29a   :  { %v355_v37 = vpop.permute.xlu0 %354  ;;  %821 = vmatpush3.bf16.msra.mxu0 %v820_v30 }
 0x29b   :  { %836 = vpow2.f32 %v341_v36  ;;  %788 = vmatpush3.msra.mxu1 %v355_v37 }
 0x29c   :  { %792 = vmatprep.subr.mxu1 %v971_v13 }
 0x2a1   :  { %v835_v38 = vpop.eup %834 }
 0x2a2   :  { %v343_v39 = vsel %vm330_vm2, %v835_v38, 0.0 }
 0x2a3   :  { %344 = vadd.xlane.f32.xlu1 %v343_v39  ;;  %v574_v39 = vsub.s32 5, %v1075_v1 }
 0x2a5   :  { %v837_v40 = vpop.eup %836 }
 0x2a6   :  { %v346_v41 = vsel %vm330_vm2, %v837_v40, 0.0 }
 0x2a7   :  { %347 = vadd.xlane.f32.xlu0 %v346_v41 }
 0x2bd   :  { %432 = vrot.lane.b32.xlu0 %v178_v42, %s973_s27 }
 0x330   :  { %v345_v43 = vpop.xlane.xlu1 %344 }
 0x331   :  { %838 = vrcp.f32 %v345_v43  ;;  %v575_v43 = vrot.slane %v1079_v10, %v574_v39 }
 0x334   :  { %v348_v44 = vpop.xlane.xlu0 %347 }
 0x335   :  { %840 = vrcp.f32 %v348_v44 }
 0x338   :  { %v433_v47 = vpop.permute.xlu0 %432 }
 0x33b   :  { %v839_v45 = vpop.eup %838 }
 0x33c   :  { %v351_v46 = vmul.f32 %v839_v45, %v835_v38  ;;  %v569_v38 = vrot.slane %v1079_v10, %v568_v34 }
 0x33e   :  { %790 = vmatmul.mubr.msk.f32.vlgmr.msra.gmra.mrb[4].mxu1 %vm357_vm3, %v351_v46 }
 0x33f   :  { %v841_v48 = vpop.eup %840  ;;  %793 = vmatpush3.msra.mxu1 %v433_v47  ;;  %794 = vmatprep.mubr.msk.f32.mxu1 %vm972_vm1, %v971_v13 }
 0x340   :  { %v352_v49 = vmul.f32 %v841_v48, %v837_v40  ;;  %v584_v48 = vsub.s32 3, %v1075_v1 }
 0x342   :  { %795 = vmatmul.mubr.msk.f32.vlgmr.msra.gmra.mrb[6].mxu1 %vm357_vm3, %v352_v49  ;;  %v585_v49 = vrot.slane %v1079_v10, %v584_v48 }
 0x411   :  { %v427_v51 = vpop.f32.mrb[4].mxu1 }
 0x412   :  { %v510_v52 = vmul.f32 %v508_v50, %v427_v51  ;;  %v791_v53 = vpop.f32.mrb[5].mxu1 }
 0x414   :  { %v513_v54 = vsel %vm512_vm4, %v510_v52, 0.0 }
 0x415   :  { %v514_v55 = vrot.slane %v513_v54, 4  ;;  %v504_v56 = vpop.f32.mrb[6].mxu1 }
 0x416   :  { %v511_v57 = vmul.f32 %v508_v50, %v504_v56  ;;  %v796_v58 = vpop.f32.mrb[7].mxu1 }
 0x417   :  { %v515_v59 = vadd.f32 %v514_v55, %v513_v54 }
 0x418   :  { %v520_v60 = vsel %vm512_vm4, %v511_v57, 0.0 }
 0x419   :  { %v516_v61 = vrot.slane %v515_v59, 2  ;;  %v521_v62 = vrot.slane %v520_v60, 4 }
 0x41b   :  { %v517_v63 = vadd.f32 %v516_v61, %v515_v59  ;;  %v522_v0 = vadd.f32 %v521_v62, %v520_v60 }
 0x41d   :  { %v523_v2 = vrot.slane %v522_v0, 2  ;;  %v518_v3 = vrot.slane %v517_v63, 1 }
 0x41f   :  { %v524_v4 = vadd.f32 %v523_v2, %v522_v0  ;;  %v519_v6 = vadd.f32 %v518_v3, %v517_v63 }
 0x421   :  { %v525_v5 = vrot.slane %v524_v4, 1  ;;  %v527_v9 = vadd.f32 %v519_v6, %v1079_v10 }
 0x423   :  { %v526_v7 = vadd.f32 %v525_v5, %v524_v4 }
 0x425   :  { %v528_v8 = vadd.f32 %v526_v7, %v1079_v10 }
 0x427   :  { %v531_v11 = vrot.slane %v528_v8, 7 }
 0x429   :  { %v533_v12 = vsel %vm532_vm5, %v531_v11, %v527_v9  ;;  %v705_v11 = vsub.s32 6, %v1075_v1 }
 0x42a   :  { %v536_v13 = vsel %vm535_vm6, %v533_v12, 0.0 }
 0x42b   :  { %537 = vadd.xlane.f32.xlu0 %v536_v13 }
 0x4b8   :  { %v538_v14 = vpop.xlane.xlu0 %537 }
 0x4b9   :  { %v540_v15 = vmul.f32 0.03125, %v538_v14 }
 0x4bb   :  { %v542_v16 = vrot.slane %v540_v15, 1  ;;  %v545_v17 = vsub.f32 %v527_v9, %v540_v15  ;;  %v706_v15 = vrot.slane %v1079_v10, %v705_v11 }
 0x4bd   :  { %v546_v18 = vsub.f32 %v528_v8, %v542_v16  ;;  %v547_v20 = vmul.f32 %v545_v17, %v545_v17  ;;  %v711_v16 = vsub.s32 7, %v1075_v1 }
 0x4bf   :  { %v548_v19 = vmul.f32 %v546_v18, %v546_v18 }
 0x4c1   :  { %v551_v21 = vrot.slane %v548_v19, 7 }
 0x4c3   :  { %v552_v22 = vsel %vm532_vm5, %v551_v21, %v547_v20  ;;  %v712_v20 = vrot.slane %v1079_v10, %v711_v16 }
 0x4c4   :  { %v554_v23 = vsel %vm535_vm6, %v552_v22, 0.0 }
 0x4c5   :  { %555 = vadd.xlane.f32.xlu1 %v554_v23 }
 0x552   :  { %v556_v31 = vpop.xlane.xlu1 %555 }
 0x553   :  { %v557_v32 = vmul.f32 0.03125, %v556_v31 }
 0x555   :  { %v558_v33 = vadd.f32 1e-05, %v557_v32 }
 0x557   :  { %842 = vrsqrt.f32 %v558_v33 }
 0x561   :  { %v843_v35 = vpop.eup %842 }
 0x562   :  { %v561_v36 = vrot.slane %v843_v35, 1  ;;  %v564_v37 = vmul.f32 %v843_v35, %v545_v17 }
 0x564   :  { %v565_v40 = vmul.f32 %v561_v36, %v546_v18  ;;  %v570_v41 = vmul.f32 %v569_v38, %v564_v37 }
 0x566   :  { %v571_v42 = vmul.f32 %v569_v38, %v565_v40  ;;  %v576_v45 = vadd.f32 %v575_v43, %v570_v41 }
 0x568   :  { %v577_v44 = vadd.f32 %v575_v43, %v571_v42 }
 0x56a   :  { %v588_v46 = vrot.slane %v577_v44, 7 }
 0x56c   :  { %v589_v47 = vsel %vm532_vm5, %v588_v46, %v576_v45 }
 0x56d   :  { %806 = vmatmul.mubr.msk.f32.vlgmr.msra.gmra.mrb[2].mxu0 %vm81_vm0, %v589_v47 }
 0x640   :  { %v658_v50 = vpop.f32.mrb[2].mxu0 }
 0x641   :  { %v659_v51 = vadd.f32 %v658_v50, %v585_v49  ;;  %v807_v52 = vpop.f32.mrb[3].mxu0 }
 0x643   :  { %v662_v53 = vmax.f32 %v659_v51, 0.0 }
 0x645   :  { %v664_v54 = vrot.slane %v662_v53, 1  ;;  %v667_v56 = vadd.f32 %v662_v53, %v576_v45 }
 0x647   :  { %v668_v55 = vadd.f32 %v664_v54, %v577_v44 }
 0x649   :  { %v671_v57 = vrot.slane %v668_v55, 7 }
 0x64b   :  { %v672_v58 = vsel %vm532_vm5, %v671_v57, %v667_v56 }
 0x64c   :  { %v674_v59 = vsel %vm535_vm6, %v672_v58, 0.0 }
 0x64d   :  { %675 = vadd.xlane.f32.xlu1 %v674_v59 }
 0x6da   :  { %v676_v60 = vpop.xlane.xlu1 %675 }
 0x6db   :  { %v677_v61 = vmul.f32 0.03125, %v676_v60 }
 0x6dd   :  { %v679_v62 = vrot.slane %v677_v61, 1  ;;  %v682_v63 = vsub.f32 %v667_v56, %v677_v61 }
 0x6df   :  { %v683_v0 = vsub.f32 %v668_v55, %v679_v62  ;;  %v684_v3 = vmul.f32 %v682_v63, %v682_v63 }
 0x6e1   :  { %v685_v2 = vmul.f32 %v683_v0, %v683_v0 }
 0x6e3   :  { %v688_v4 = vrot.slane %v685_v2, 7 }
 0x6e5   :  { %v689_v5 = vsel %vm532_vm5, %v688_v4, %v684_v3 }
 0x6e6   :  { %v691_v6 = vsel %vm535_vm6, %v689_v5, 0.0 }
 0x6e7   :  { %692 = vadd.xlane.f32.xlu1 %v691_v6 }
 0x774   :  { %v693_v7 = vpop.xlane.xlu1 %692 }
 0x775   :  { %v694_v8 = vmul.f32 0.03125, %v693_v7 }
 0x777   :  { %v695_v9 = vadd.f32 1e-05, %v694_v8 }
 0x779   :  { %844 = vrsqrt.f32 %v695_v9 }
 0x783   :  { %v845_v12 = vpop.eup %844 }
 0x784   :  { %v698_v13 = vrot.slane %v845_v12, 1  ;;  %v701_v14 = vmul.f32 %v845_v12, %v682_v63 }
 0x786   :  { %v702_v17 = vmul.f32 %v698_v13, %v683_v0  ;;  %v707_v18 = vmul.f32 %v706_v15, %v701_v14 }
 0x788   :  { %v708_v19 = vmul.f32 %v706_v15, %v702_v17  ;;  %v713_v22 = vadd.f32 %v712_v20, %v707_v18 }
 0x78a   :  { %v714_v21 = vadd.f32 %v712_v20, %v708_v19 }
 0x78c   :  { %v717_v23 = vrot.slane %v714_v21, 7 }
 0x78e   :  { %v718_v24 = vsel %vm532_vm5, %v717_v23, %v713_v22 }
 0x78f   :  { %720 = vst.msk [vmem:[#allocation10] sm:$0x3] %vm535_vm6, %v718_v24 }
 0x790   :  { %945 = shalt.err (!%p942_p8)
}
 0x791   :  { %s946_s15 = scalar_lea.hbm %s1152_s4, 32 }
 0x792   :  { %p947_p9 = scmp.ne.s32.totalorder %s1152_s4, %s946_s15  ;;  %p950_p10 = scmp.lt.u32.totalorder %s946_s15, %s1152_s4 }
 0x794   :  { %p952_p11 = pnand %p950_p10, %p947_p9 }
 0x796   :  { %955 = shalt.err (!%p952_p11)
}
 0x797   :  { %730 = dma.vmem_to_hbm [thread:$0]  %s728_s12, 32, %s1152_s4, [#allocation4]  }
 0x798   :  { %962 = dma.done.wait [#allocation4], 32  }
 0x799   :  { %963 = vsyncadd [#allocation4], 4294967264 }
 0x79a   :  { %734 = vsyncpa [#allocation3], 1 }
 0x79b   :  { %735 = vsyncpa [#allocation6], 1 }
 0x79c   :  { %736 = vsyncpa [#allocation9], 1 }
 0x79d   :  { %737 = vsyncpa [#allocation4], 1 }

</bundles_post_ra>
